<compile_context>
chip_gen: v6e
topology: v6e:2x2x1
jax: 0.10.0
libtpu: 0.0.40
codegen_flags: <defaults>
</compile_context>

<pallas_src>
import functools
import math

import jax
import jax.numpy as jnp
from jax.experimental import pallas as pl
from jax.experimental.pallas import tpu as pltpu


def timesblock_kernel(xw_ref, w1_ref, b1_ref, w2_ref, b2_ref, o_ref, *,
                      hidden, pack, groups):
    """One grid step processes `rows` packed rows (whole sequences only).

    xw_ref : (rows, (pack+2)*Cin)        bf16  windowed, time-packed input (wrapper-built)
    w1_ref : ((pack+2)*Cin, 2*pack*H)    bf16  conv1 taps + skip 1x1, fused along lanes
    b1_ref : (1, 2*pack*H)               f32
    w2_ref : (3*pack*H, pack*H)          bf16  conv2 taps, fused along K (block-banded)
    b2_ref : (1, pack*H)                 f32
    o_ref  : (rows, pack*H)              f32   time-packed output (== (rows*pack, H) row-major)
    """
    ph = pack * hidden
    rows = xw_ref.shape[0]

    # conv1 (all 3 taps) + skip 1x1: a single MXU matmul on the windowed input.
    t = jnp.dot(xw_ref[...], w1_ref[...], preferred_element_type=jnp.float32) + b1_ref[...]
    h = jnp.maximum(t[:, :ph], 0.0)          # (rows, ph) f32, ReLU on the VPU
    skip = t[:, ph:]                         # (rows, ph) f32

    # conv2: roll the conv2 *input* one packed row up/down (XLU slot), mask sequence
    # boundaries, and fuse the three tap matmuls along K into one MXU matmul.
    g = jax.lax.broadcasted_iota(jnp.int32, (rows, 1), 0) % groups   # packed row within sequence
    h_prev = jnp.where(g != 0, pltpu.roll(h, shift=1, axis=0), 0.0)
    h_next = jnp.where(g != groups - 1, pltpu.roll(h, shift=rows - 1, axis=0), 0.0)
    lhs2 = jnp.concatenate([h_prev, h, h_next], axis=-1).astype(jnp.bfloat16)   # (rows, 3*ph)
    y = jnp.dot(lhs2, w2_ref[...], preferred_element_type=jnp.float32) + b2_ref[...]

    o_ref[...] = (y + skip).astype(o_ref.dtype)


# ----------------------------- wrapper-side weight fusion -----------------------------

def _conv_rhs_windowed(w, pack):
    """w: (3, C, H) conv taps -> ((pack+2)*C, pack*H) RHS acting on the windowed input
    [x[t0-1], x[t0], ..., x[t0+pack-1], x[t0+pack]]  (window position s <-> relative time s-1)."""
    _, c, h = w.shape
    zero = jnp.zeros((c, h), w.dtype)
    rows = []
    for s in range(pack + 2):
        cols = [w[s - jo] if 0 <= s - jo <= 2 else zero for jo in range(pack)]
        rows.append(jnp.concatenate(cols, axis=1))
    return jnp.concatenate(rows, axis=0)


def _skip_rhs_windowed(ws, pack):
    """ws: (C, H) 1x1 skip weights -> ((pack+2)*C, pack*H) RHS on the same windowed input."""
    c, h = ws.shape
    zero = jnp.zeros((c, h), ws.dtype)
    rows = []
    for s in range(pack + 2):
        cols = [ws if s - 1 == jo else zero for jo in range(pack)]
        rows.append(jnp.concatenate(cols, axis=1))
    return jnp.concatenate(rows, axis=0)


def _conv_rhs_blocked(w, pack):
    """w: (3, H, H) conv2 taps -> (3*pack*H, pack*H) RHS acting on [h_prev | h_cur | h_next]."""
    _, hin, hout = w.shape
    zero = jnp.zeros((hin, hout), w.dtype)
    rows = []
    for blk in range(3):                       # previous / current / next packed row
        for j in range(pack):
            rel = (blk - 1) * pack + j         # time offset relative to this row's first step
            cols = [w[rel - jo + 1] if 0 <= rel - jo + 1 <= 2 else zero for jo in range(pack)]
            rows.append(jnp.concatenate(cols, axis=1))
    return jnp.concatenate(rows, axis=0)


# ----------------------------- per-chip tiling heuristics -----------------------------

def _chip_config():
    """Returns (per-step VMEM budget, vmem_limit_bytes, minimum grid steps)."""
    vmem_cap = 64 << 20                          # conservative default (v7x per-core VMEM)
    try:
        cap = getattr(pltpu.get_tpu_info(), "vmem_capacity_bytes", None)
        if cap:
            vmem_cap = int(cap)
    except Exception:
        pass
    min_steps = 1                                # v5e/v6e: one TensorCore -> don't force splits
    try:
        if "v7" in jax.devices()[0].device_kind.lower():
            min_steps = 4                        # v7x: 2 TCs -> >=2 pipelined steps per core
    except Exception:
        pass
    if vmem_cap >= (100 << 20):                  # 128-MiB parts (v5e/v6e): use the headroom
        return 48 << 20, 96 << 20, min_steps
    return 14 << 20, 32 << 20, min_steps         # 64-MiB parts (v7x): leave double-buffer room


def _pick_seq_tile(batch, groups, bytes_per_row, fixed_bytes, budget, min_steps):
    """Sequences per grid step: largest tile fitting the VMEM budget, sublane-aligned
    (prefer 16-row multiples for bf16 blocks), leaving >= min_steps grid steps if possible."""
    best_key, best_bb = None, batch
    for bb in range(1, batch + 1):
        if batch % bb:
            continue
        rows = bb * groups
        if bb != batch and rows % 8:
            continue                             # non-final tiles must be sublane-aligned
        fits = fixed_bytes + rows * bytes_per_row <= budget
        key = (fits, batch // bb >= min_steps, rows % 16 == 0, rows if fits else -rows)
        if best_key is None or key > best_key:
            best_key, best_bb = key, bb
    return best_bb


# ----------------------------------- public wrapper -----------------------------------

def timesblock_pallas(x, w1, b1, w2, b2, ws=None, bs=None):
    """x: (B, L, Cin) f32.  Weights channels-last (PyTorch layouts pre-transposed):
       w1 (3, Cin, H), b1 (H,), w2 (3, H, H), b2 (H,), ws (Cin, H) or None, bs (H,) or None.
       Returns (B, L, H) f32."""
    B, L, Cin = x.shape
    H = w1.shape[-1]
    if ws is None:                               # skip_conv is None <=> Cin == H: identity residual
        ws = jnp.eye(Cin, H, dtype=jnp.float32)  # (residual then passes through bf16 like x itself)
        bs = jnp.zeros((H,), jnp.float32)

    # Time-pack factor: pack P time steps per row so P*H is a multiple of 128 -> lane-dense output.
    P = 1
    if H < 128:
        p0 = 128 // math.gcd(H, 128)
        if L % p0 == 0 and p0 * H <= 512:
            P = p0
    G = L // P                                   # packed rows per sequence
    PH = P * H
    Kin = (P + 2) * Cin
    Np = B * G

    # Windowed, time-packed input rows: [x[t0-1], x[t0..t0+P-1], x[t0+P]] per packed row,
    # zero padded at sequence ends (conv "same" padding handled here, exactly).
    xp = jnp.pad(x, ((0, 0), (1, 1), (0, 0)))
    x_win = jnp.stack([xp[:, s:s + L:P] for s in range(P + 2)], axis=2)    # (B, G, P+2, Cin)
    x_win = x_win.reshape(Np, Kin).astype(jnp.bfloat16)

    # Fused weights (built once; tiny).
    rhs1 = jnp.concatenate([_conv_rhs_windowed(w1, P), _skip_rhs_windowed(ws, P)],
                           axis=1).astype(jnp.bfloat16)                    # (Kin, 2*PH)
    rhs2 = _conv_rhs_blocked(w2, P).astype(jnp.bfloat16)                   # (3*PH, PH)
    bias1 = jnp.concatenate([jnp.tile(b1, P), jnp.tile(bs, P)]
                            ).reshape(1, 2 * PH).astype(jnp.float32)
    bias2 = jnp.tile(b2, P).reshape(1, PH).astype(jnp.float32)

    budget, vmem_limit, min_steps = _chip_config()
    lane = lambda n: ((n + 127) // 128) * 128
    bytes_per_row = (2 * lane(Kin) * 2           # input block (bf16, double-buffered, lane-padded)
                     + 2 * lane(PH) * 4          # output block (f32, double-buffered)
                     + 12 * lane(PH) * 4)        # live f32/bf16 temporaries + spill headroom
    fixed_bytes = (2 * 2 * (rhs1.size + rhs2.size)
                   + 2 * 4 * (bias1.size + bias2.size) + (2 << 20))
    Bb = _pick_seq_tile(B, G, bytes_per_row, fixed_bytes, budget, min_steps)
    TN = Bb * G
    grid = (Np // TN,)

    const = lambda shape: pl.BlockSpec(shape, lambda i: (0,) * len(shape))
    flops = 2 * Np * (Kin * 2 * PH + 3 * PH * PH)
    bytes_accessed = (x_win.size * 2 + Np * PH * 4
                      + (rhs1.size + rhs2.size) * 2 + (bias1.size + bias2.size) * 4)

    out = pl.pallas_call(
        functools.partial(timesblock_kernel, hidden=H, pack=P, groups=G),
        out_shape=jax.ShapeDtypeStruct((Np, PH), jnp.float32),
        grid_spec=pltpu.PrefetchScalarGridSpec(
            num_scalar_prefetch=0,
            grid=grid,
            in_specs=[
                pl.BlockSpec((TN, Kin), lambda i: (i, 0)),   # packed activations, tiled over rows
                const((Kin, 2 * PH)),                        # conv1 + skip weights (VMEM-resident)
                const((1, 2 * PH)),
                const((3 * PH, PH)),                         # conv2 weights (VMEM-resident)
                const((1, PH)),
            ],
            out_specs=pl.BlockSpec((TN, PH), lambda i: (i, 0)),
        ),
        compiler_params=pltpu.CompilerParams(
            dimension_semantics=("parallel",),
            vmem_limit_bytes=vmem_limit),
        cost_estimate=pl.CostEstimate(
            flops=flops, transcendentals=0, bytes_accessed=bytes_accessed),
    )(x_win, rhs1, bias1, rhs2, bias2)

    # (Np, P*H) row-major is bit-identical to (B, L, H): the unpack is a free reshape.
    return out.reshape(B, L, H)


def timesblock_reference(x, w1, b1, w2, b2, ws, bs):
    """Pure-JAX f32 reference matching the PyTorch forward (channels-last math)."""
    def conv3(inp, w, b):                        # inp (B,L,C), w (3,C,H), b (H,)
        xpad = jnp.pad(inp, ((0, 0), (1, 1), (0, 0)))
        L = inp.shape[1]
        return xpad[:, 0:L] @ w[0] + xpad[:, 1:L + 1] @ w[1] + xpad[:, 2:L + 2] @ w[2] + b
    h = jax.nn.relu(conv3(x, w1, b1))
    y = conv3(h, w2, b2)
    return y + (x @ ws + bs)


if __name__ == "__main__":
    B, L, Cin, H = 2, 16, 4, 32   # input_dim=4, hidden_dim=32 -> skip_conv present

    key = jax.random.PRNGKey(0)
    k_x, k_w1, k_b1, k_w2, k_b2, k_ws, k_bs = jax.random.split(key, 7)

    # Deterministic synthetic parameters (PyTorch layouts pre-transposed):
    #   conv1.weight (H, Cin, 3) -> w1 (3, Cin, H);  conv2.weight (H, H, 3) -> w2 (3, H, H)
    #   skip_conv.weight (H, Cin, 1) -> ws (Cin, H);  biases (H,)
    x  = jax.random.normal(k_x,  (B, L, Cin), jnp.float32)
    w1 = jax.random.normal(k_w1, (3, Cin, H), jnp.float32) * 0.1
    b1 = jax.random.normal(k_b1, (H,),        jnp.float32) * 0.1
    w2 = jax.random.normal(k_w2, (3, H, H),   jnp.float32) * 0.1
    b2 = jax.random.normal(k_b2, (H,),        jnp.float32) * 0.1
    ws = jax.random.normal(k_ws, (Cin, H),    jnp.float32) * 0.1
    bs = jax.random.normal(k_bs, (H,),        jnp.float32) * 0.1

    out = timesblock_pallas(x, w1, b1, w2, b2, ws, bs)
    out = jax.block_until_ready(out)

    ref = timesblock_reference(x, w1, b1, w2, b2, ws, bs)
    assert out.shape == (B, L, H)
    # bf16 MXU operands with f32 accumulation -> slightly loosened tolerance vs the f32 ref.
    assert jnp.allclose(out, ref, atol=3e-2, rtol=3e-2), "mismatch vs reference"

    print("KERNEL_OK")
</pallas_src>

<mosaic_0001>
module attributes {stable_mosaic.version = 11 : i64} {
  func.func @timesblock_kernel(%arg0: i32, %arg1: memref<8x24xbf16, #tpu.memory_space<vmem>>, %arg2: memref<24x256xbf16, #tpu.memory_space<vmem>>, %arg3: memref<1x256xf32, #tpu.memory_space<vmem>>, %arg4: memref<384x128xbf16, #tpu.memory_space<vmem>>, %arg5: memref<1x128xf32, #tpu.memory_space<vmem>>, %arg6: memref<8x128xf32, #tpu.memory_space<vmem>>) attributes {dimension_semantics = [#tpu.dimension_semantics<parallel>], iteration_bounds = array<i64: 1>, scalar_prefetch = 0 : i64, scratch_operands = 0 : i64, tpu.core_type = #tpu.core_type<tc>, window_params = [{transform_indices = @transform_0, window_bounds = array<i64: 8, 24>}, {pipeline_mode = #tpu.pipeline_mode<synchronous>, transform_indices = @transform_1, window_bounds = array<i64: 24, 256>}, {pipeline_mode = #tpu.pipeline_mode<synchronous>, transform_indices = @transform_2, window_bounds = array<i64: 1, 256>}, {pipeline_mode = #tpu.pipeline_mode<synchronous>, transform_indices = @transform_3, window_bounds = array<i64: 384, 128>}, {pipeline_mode = #tpu.pipeline_mode<synchronous>, transform_indices = @transform_4, window_bounds = array<i64: 1, 128>}, {transform_indices = @transform_5, window_bounds = array<i64: 8, 128>}]} {
    %c0 = arith.constant 0 : index
    %c0_0 = arith.constant 0 : index
    %0 = vector.load %arg1[%c0, %c0_0] : memref<8x24xbf16, #tpu.memory_space<vmem>>, vector<8x24xbf16>
    %c0_1 = arith.constant 0 : index
    %c0_2 = arith.constant 0 : index
    %1 = vector.load %arg2[%c0_1, %c0_2] : memref<24x256xbf16, #tpu.memory_space<vmem>>, vector<24x256xbf16>
    %cst = arith.constant dense<0.000000e+00> : vector<8x256xf32>
    %2 = tpu.matmul %0, %1, %cst {dimension_numbers = #tpu.dot_dimension_numbers<[1], [0], [0], [1], [0, 0, 1, 1], [], []>} : vector<8x24xbf16>, vector<24x256xbf16>, vector<8x256xf32> -> vector<8x256xf32>
    %c0_3 = arith.constant 0 : index
    %c0_4 = arith.constant 0 : index
    %3 = vector.load %arg3[%c0_3, %c0_4] : memref<1x256xf32, #tpu.memory_space<vmem>>, vector<1x256xf32>
    %4 = vector.broadcast %3 : vector<1x256xf32> to vector<8x256xf32>
    %5 = arith.addf %2, %4 : vector<8x256xf32>
    %6 = vector.extract_strided_slice %5 {offsets = [0, 0], sizes = [8, 128], strides = [1, 1]} : vector<8x256xf32> to vector<8x128xf32>
    %cst_5 = arith.constant 0.000000e+00 : f32
    %7 = vector.broadcast %cst_5 : f32 to vector<8x128xf32>
    %8 = arith.maximumf %6, %7 : vector<8x128xf32>
    %9 = vector.extract_strided_slice %5 {offsets = [0, 128], sizes = [8, 128], strides = [1, 1]} : vector<8x256xf32> to vector<8x128xf32>
    %10 = tpu.iota {dimensions = array<i32: 0>} : vector<8x1xi32>
    %c4_i32 = arith.constant 4 : i32
    %c0_i32 = arith.constant 0 : i32
    %11 = arith.cmpi eq, %c4_i32, %c0_i32 : i32
    %c1_i32 = arith.constant 1 : i32
    %12 = arith.select %11, %c1_i32, %c4_i32 : i32
    %13 = vector.broadcast %12 : i32 to vector<8x1xi32>
    %14 = arith.remsi %10, %13 : vector<8x1xi32>
    %c0_i32_6 = arith.constant 0 : i32
    %15 = vector.broadcast %c0_i32_6 : i32 to vector<8x1xi32>
    %16 = arith.cmpi ne, %14, %15 : vector<8x1xi32>
    %c0_i32_7 = arith.constant 0 : i32
    %17 = vector.broadcast %c0_i32_7 : i32 to vector<8x1xi32>
    %18 = arith.cmpi slt, %14, %17 : vector<8x1xi32>
    %c0_i32_8 = arith.constant 0 : i32
    %19 = arith.cmpi slt, %12, %c0_i32_8 : i32
    %20 = vector.broadcast %19 : i1 to vector<8x1xi1>
    %21 = vector.broadcast %20 : vector<8x1xi1> to vector<8x1xi1>
    %22 = arith.xori %18, %21 : vector<8x1xi1>
    %23 = arith.andi %22, %16 : vector<8x1xi1>
    %24 = vector.broadcast %12 : i32 to vector<8x1xi32>
    %25 = arith.addi %14, %24 : vector<8x1xi32>
    %26 = arith.select %23, %25, %14 : vector<8x1xi1>, vector<8x1xi32>
    %c0_i32_9 = arith.constant 0 : i32
    %27 = vector.broadcast %c0_i32_9 : i32 to vector<8x1xi32>
    %28 = arith.cmpi ne, %26, %27 : vector<8x1xi32>
    %c1_i32_10 = arith.constant 1 : i32
    %29 = tpu.dynamic_rotate %8 by %c1_i32_10 dim 0 : vector<8x128xf32>, i32 -> vector<8x128xf32>
    %cst_11 = arith.constant 0.000000e+00 : f32
    %30 = vector.shape_cast %28 : vector<8x1xi1> to vector<8x1xi1>
    %31 = vector.broadcast %30 : vector<8x1xi1> to vector<8x128xi1>
    %32 = vector.broadcast %cst_11 : f32 to vector<8x128xf32>
    %33 = arith.select %31, %29, %32 : vector<8x128xi1>, vector<8x128xf32>
    %c3_i32 = arith.constant 3 : i32
    %34 = vector.broadcast %c3_i32 : i32 to vector<8x1xi32>
    %35 = arith.cmpi ne, %26, %34 : vector<8x1xi32>
    %c7_i32 = arith.constant 7 : i32
    %36 = tpu.dynamic_rotate %8 by %c7_i32 dim 0 : vector<8x128xf32>, i32 -> vector<8x128xf32>
    %cst_12 = arith.constant 0.000000e+00 : f32
    %37 = vector.shape_cast %35 : vector<8x1xi1> to vector<8x1xi1>
    %38 = vector.broadcast %37 : vector<8x1xi1> to vector<8x128xi1>
    %39 = vector.broadcast %cst_12 : f32 to vector<8x128xf32>
    %40 = arith.select %38, %36, %39 : vector<8x128xi1>, vector<8x128xf32>
    %41 = tpu.concatenate %33, %8, %40 in 1 : vector<8x128xf32>, vector<8x128xf32>, vector<8x128xf32> -> vector<8x384xf32>
    %42 = arith.truncf %41 : vector<8x384xf32> to vector<8x384xbf16>
    %c0_13 = arith.constant 0 : index
    %c0_14 = arith.constant 0 : index
    %43 = vector.load %arg4[%c0_13, %c0_14] : memref<384x128xbf16, #tpu.memory_space<vmem>>, vector<384x128xbf16>
    %cst_15 = arith.constant dense<0.000000e+00> : vector<8x128xf32>
    %44 = tpu.matmul %42, %43, %cst_15 {dimension_numbers = #tpu.dot_dimension_numbers<[1], [0], [0], [1], [0, 0, 1, 1], [], []>} : vector<8x384xbf16>, vector<384x128xbf16>, vector<8x128xf32> -> vector<8x128xf32>
    %c0_16 = arith.constant 0 : index
    %c0_17 = arith.constant 0 : index
    %45 = vector.load %arg5[%c0_16, %c0_17] : memref<1x128xf32, #tpu.memory_space<vmem>>, vector<1x128xf32>
    %46 = vector.broadcast %45 : vector<1x128xf32> to vector<8x128xf32>
    %47 = arith.addf %44, %46 : vector<8x128xf32>
    %48 = arith.addf %47, %9 : vector<8x128xf32>
    %c0_18 = arith.constant 0 : index
    %c0_19 = arith.constant 0 : index
    %49 = vector.load %arg6[%c0_18, %c0_19] : memref<8x128xf32, #tpu.memory_space<vmem>>, vector<8x128xf32>
    tpu.vector_store %arg6[%c0_18, %c0_19], %48 {strides = array<i32>} : memref<8x128xf32, #tpu.memory_space<vmem>>, vector<8x128xf32>,
    return
  }
  func.func @transform_0(%arg0: i32) -> (i32, i32) {
    %c0_i32 = arith.constant 0 : i32
    %c0_i32_0 = arith.constant 0 : i32
    return %arg0, %c0_i32 : i32, i32
  }
  func.func @transform_1(%arg0: i32) -> (i32, i32) {
    %c0_i32 = arith.constant 0 : i32
    %c0_i32_0 = arith.constant 0 : i32
    %c0_i32_1 = arith.constant 0 : i32
    return %c0_i32, %c0_i32_0 : i32, i32
  }
  func.func @transform_2(%arg0: i32) -> (i32, i32) {
    %c0_i32 = arith.constant 0 : i32
    %c0_i32_0 = arith.constant 0 : i32
    %c0_i32_1 = arith.constant 0 : i32
    return %c0_i32, %c0_i32_0 : i32, i32
  }
  func.func @transform_3(%arg0: i32) -> (i32, i32) {
    %c0_i32 = arith.constant 0 : i32
    %c0_i32_0 = arith.constant 0 : i32
    %c0_i32_1 = arith.constant 0 : i32
    return %c0_i32, %c0_i32_0 : i32, i32
  }
  func.func @transform_4(%arg0: i32) -> (i32, i32) {
    %c0_i32 = arith.constant 0 : i32
    %c0_i32_0 = arith.constant 0 : i32
    %c0_i32_1 = arith.constant 0 : i32
    return %c0_i32, %c0_i32_0 : i32, i32
  }
  func.func @transform_5(%arg0: i32) -> (i32, i32) {
    %c0_i32 = arith.constant 0 : i32
    %c0_i32_0 = arith.constant 0 : i32
    return %arg0, %c0_i32 : i32, i32
  }
}

</mosaic_0001>

<bundles_post_ra>
// kernel: tpu_custom_call.1
= control target key start
LH: loop header
LB: loop body
LE: loop exit
PB: predicated region body
PF: predicated region fallthrough
CT: control target
= control target key end

     0   :  { %10 = vsyncpa [#allocation3], 0  ;;  %s742_s0 = inlined_call_operand.hbm [shape: bf16[8,24], index: 0, kind: input, shape index: {}]   ;;  %s743_s1 = inlined_call_operand.hbm [shape: bf16[24,256], index: 1, kind: input, shape index: {}]   ;;  %s744_s2 = inlined_call_operand.vmem [shape: f32[1,256], index: 2, kind: input, shape index: {}]   ;;  %s745_s3 = inlined_call_operand.hbm [shape: bf16[384,128], index: 3, kind: input, shape index: {}]   ;;  %s746_s4 = inlined_call_operand.vmem [shape: f32[1,128], index: 4, kind: input, shape index: {}]   ;;  %s747_s5 = inlined_call_operand.hbm [shape: f32[8,128], index: 5, kind: output, shape index: {}]  }
   0x1   :  { %11 = vsyncpa [#allocation6], 0 }
   0x2   :  { %12 = vsyncpa [#allocation4], 0  ;;  %s683_s18 = smov [#allocation5]  }
   0x3   :  { %s28_s19 = sshll.u32 %s683_s18, 4  ;;  %s29_s19 = int_to_ptr.vmem [resolvable:$true] %s28_s19 }
   0x4   :  { %s605_s20 = scalar_lea.vmem %s29_s19, 384  ;;  %p610_p1 = scmp.lt.s32.totalorder %s29_s19, %s29_s19 }
   0x5   :  { %p606_p0 = scmp.ne.s32.totalorder %s29_s19, %s605_s20  ;;  %p611_p2 = scmp.lt.s32.totalorder %s605_s20, %s605_s20 }
   0x7   :  { %p612_p3 = por %p611_p2, %p610_p1 }
   0x9   :  { %p613_p4 = pnand %p612_p3, %p606_p0 }
   0xb   :  { %616 = shalt.err (!%p613_p4)
}
   0xc   :  { %s684_s21 = smov 128   ;;  %s685_s22 = smov 8  }
   0xd   :  { %34 = dma.hbm_to_vmem [thread:$0]  %s743_s1, 384, %s29_s19, [#allocation6], %s684_s21, %s684_s21, %s685_s22  }
   0xe   :  { %s686_s25 = smov [#allocation2]   ;;  %s687_s27 = smov [#allocation7]  }
   0xf   :  { %s19_s26 = sshll.u32 %s686_s25, 4  ;;  %s42_s28 = sshll.u32 %s687_s27, 4  ;;  %s20_s26 = int_to_ptr.vmem [resolvable:$true] %s19_s26  ;;  %s43_s28 = int_to_ptr.vmem [resolvable:$true] %s42_s28 }
  0x10   :  { %s625_s29 = scalar_lea.vmem %s20_s26, 64  ;;  %p630_p6 = scmp.lt.s32.totalorder %s20_s26, %s20_s26 }
  0x11   :  { %p626_p5 = scmp.ne.s32.totalorder %s20_s26, %s625_s29  ;;  %p631_p7 = scmp.lt.s32.totalorder %s625_s29, %s625_s29 }
  0x13   :  { %p632_p8 = por %p631_p7, %p630_p6 }
  0x15   :  { %p633_p9 = pnand %p632_p8, %p626_p5 }
  0x17   :  { %636 = shalt.err (!%p633_p9)
}
  0x18   :  { %22 = dma.hbm_to_vmem [thread:$0]  %s742_s0, 64, %s20_s26, [#allocation3]  }
  0x19   :  { %s645_s7 = scalar_lea.vmem %s43_s28, 3072  ;;  %p650_p11 = scmp.lt.s32.totalorder %s43_s28, %s43_s28 }
  0x1a   :  { %p646_p10 = scmp.ne.s32.totalorder %s43_s28, %s645_s7  ;;  %p651_p12 = scmp.lt.s32.totalorder %s645_s7, %s645_s7 }
  0x1c   :  { %p652_p13 = por %p651_p12, %p650_p11 }
  0x1e   :  { %p653_p0 = pnand %p652_p13, %p646_p10 }
  0x20   :  { %656 = shalt.err (!%p653_p0)
}
  0x21   :  { %s688_s1 = smov 64   ;;  %s689_s8 = smov 4  }
  0x22   :  { %48 = dma.hbm_to_vmem [thread:$0]  %s745_s3, 3072, %s43_s28, [#allocation6], %s688_s1, %s688_s1, %s689_s8  }
  0x23   :  { %677 = dma.done.wait [#allocation3], 64  }
  0x24   :  { %678 = vsyncadd [#allocation3], 4294967232 }
  0x25   :  { %679 = dma.done.wait [#allocation6], 3456  }
  0x26   :  { %680 = vsyncadd [#allocation6], 4294963840  ;;  %v690_v0 = vmov 0   ;;  %v64_v1 = vld [vmem:[#allocation5 + $0x10] sm:$0xff]  ;;  %vm96_vm0 = vcmask 1043456   ;;  %v576_v9 = vld [vmem:[#allocation7 + $0x70] sm:$0xff]   ;;  %v67_v33 = vlaneseq }
  0x27   :  { %135 = vmatprep.mubr.bf16.mxu0 %v690_v0  ;;  %v472_v2 = vcombine.high %v64_v1, %v64_v1  ;;  %v471_v3 = vcombine.low %v64_v1, %v64_v1  ;;  %v570_v4 = vld [vmem:[#allocation5 + $0x4] ss:$8 sps:$4 sm:$0xff]   ;;  %v573_v5 = vld [vmem:[#allocation7 + $0x78] sm:$0xff]   ;;  %v572_v8 = vld [vmem:[#allocation5] ss:$8 sps:$4 sm:$0xff]   ;;  %vm92_vm1 = vcmask 195584  }
  0x28   :  { %v574_v7 = vld [vmem:[#allocation7 + $0x38] sm:$0xff]   ;;  %506 = vmatprep.subr.bf16.mxu1 %v573_v5  ;;  %v61_v10 = vld [vmem:[#allocation2] sm:$0xf]  ;;  %v577_v11 = vld [vmem:[#allocation7 + $0x30] sm:$0xff]   ;;  %v691_v14 = vmov 0.0   ;;  %vm692_vm2 = vmmov 0  }
  0x29   :  { %473 = vmatprep.subr.msk.bf16.mxu0 %vm96_vm0, %v472_v2  ;;  %v98_v6 = vsel %vm96_vm0, %v471_v3, 0  ;;  %507 = vmatpush3.bf16.msra.mxu1 %v574_v7  ;;  %v575_v12 = vld [vmem:[#allocation7 + $0xb8] sm:$0xff]   ;;  %v579_v13 = vld [vmem:[#allocation7 + $0x68] sm:$0xff]   ;;  %v582_v16 = vld [vmem:[#allocation7 + $0x60] sm:$0xff]   ;;  %v68_v34 = vshrl.u32 %v67_v33, 7  ;;  %s693_s12 = smov [#allocation8]  }
  0x2a   :  { %116 = vmatpush1.bf16.msra.mxu0 %v98_v6  ;;  %508 = vmatprep.subr.bf16.mxu1 %v576_v9  ;;  %v580_v15 = vld [vmem:[#allocation7 + $0x28] sm:$0xff]   ;;  %v578_v17 = vld [vmem:[#allocation7 + $0xb0] sm:$0xff]   ;;  %v583_v18 = vld [vmem:[#allocation7 + $0x20] sm:$0xff]   ;;  %s459_s13 = sshll.u32 %s693_s12, 4  ;;  %s460_s13 = int_to_ptr.vmem [resolvable:$true] %s459_s13 }
  0x2b   :  { %117 = vmatprep.subr.bf16.mxu0 %v570_v4  ;;  %v585_v19 = vld [vmem:[#allocation7 + $0x58] sm:$0xff]   ;;  %v581_v20 = vld [vmem:[#allocation7 + $0xa8] sm:$0xff]   ;;  %v588_v22 = vld [vmem:[#allocation7 + $0x50] sm:$0xff]   ;;  %v69_v35 = vsub.s32 0, %v68_v34  ;;  %v73_v37 = vsub.s32 1, %v68_v34  ;;  %v151_v39 = vand.u32 3, %v68_v34  ;;  %p662_p2 = scmp.lt.s32.totalorder %s460_s13, %s460_s13 }
  0x2c   :  { %v586_v21 = vld [vmem:[#allocation7 + $0x18] sm:$0xff]   ;;  %v584_v23 = vld [vmem:[#allocation7 + $0xa0] sm:$0xff]   ;;  %v589_v24 = vld [vmem:[#allocation7 + $0x10] sm:$0xff]   ;;  %s657_s14 = scalar_lea.vmem %s460_s13, 128 }
  0x2d   :  { %509 = vmatpush3.bf16.msra.mxu1 %v577_v11  ;;  %v587_v25 = vld [vmem:[#allocation7 + $0x98] sm:$0xff]   ;;  %v590_v26 = vld [vmem:[#allocation7 + $0x90] sm:$0xff]   ;;  %v591_v27 = vld [vmem:[#allocation7 + $0x48] sm:$0xff]   ;;  %vm159_vm3 = vcmp.ne.s32.totalorder %v151_v39, 0  ;;  %vm164_vm4 = vcmp.ne.s32.totalorder %v151_v39, 3  ;;  %p658_p1 = scmp.ne.s32.totalorder %s460_s13, %s657_s14  ;;  %p663_p3 = scmp.lt.s32.totalorder %s657_s14, %s657_s14 }
  0x2e   :  { %118 = vmatpush1.bf16.msra.mxu0 %v572_v8  ;;  %510 = vmatprep.subr.bf16.mxu1 %v579_v13  ;;  %v592_v28 = vld [vmem:[#allocation7 + $0x8] sm:$0xff]   ;;  %v594_v30 = vld [vmem:[#allocation7 + $0x40] sm:$0xff]   ;;  %vm500_vm5 = vmpackc.low %vm159_vm3, %vm159_vm3 }
  0x2f   :  { %537 = vmatprep.subr.bf16.mxu0 %v691_v14  ;;  %v593_v29 = vld [vmem:[#allocation7 + $0x88] sm:$0xff]   ;;  %v595_v31 = vld [vmem:[#allocation7] sm:$0xff]   ;;  %vm503_vm6 = vmpackc.low %vm164_vm4, %vm164_vm4  ;;  %p664_p4 = por %p663_p3, %p662_p2 }
  0x30   :  { %v596_v32 = vld [vmem:[#allocation7 + $0x80] sm:$0xff]  }
  0x31   :  { %474 = vmatmul.mubr.msk.bf16.vlgmr.msra.gmra.mxu0 %vm92_vm1, %v61_v10  ;;  %511 = vmatpush3.bf16.msra.mxu1 %v580_v15  ;;  %v65_v36 = vld [vmem:[%s744_s2] sm:$0x3]  ;;  %p665_p5 = pnand %p664_p4, %p658_p1 }
  0x32   :  { %538 = vmatpush3.bf16.msra.mxu0 %v575_v12  ;;  %512 = vmatprep.subr.bf16.mxu1 %v582_v16  ;;  %v70_v38 = vrot.slane %v65_v36, %v69_v35  ;;  %v74_v40 = vrot.slane %v65_v36, %v73_v37  ;;  %v475_v55 = vld [vmem:[%s746_s4] ss:$0 sm:$0xff] }
  0x33   :  { %539 = vmatprep.subr.bf16.mxu0 %v691_v14  ;;  %553 = vmatprep.mubr.msk.bf16.mxu0 %vm692_vm2, %v691_v14 }
  0x35   :  { %513 = vmatpush3.bf16.msra.mxu1 %v583_v18 }
  0x36   :  { %540 = vmatpush3.bf16.msra.mxu0 %v578_v17  ;;  %514 = vmatprep.subr.bf16.mxu1 %v585_v19 }
  0x37   :  { %541 = vmatprep.subr.bf16.mxu0 %v691_v14 }
  0x39   :  { %515 = vmatpush3.bf16.msra.mxu1 %v586_v21 }
  0x3a   :  { %542 = vmatpush3.bf16.msra.mxu0 %v581_v20  ;;  %516 = vmatprep.subr.bf16.mxu1 %v588_v22 }
  0x3b   :  { %543 = vmatprep.subr.bf16.mxu0 %v691_v14 }
  0x3d   :  { %517 = vmatpush3.bf16.msra.mxu1 %v589_v24 }
  0x3e   :  { %544 = vmatpush3.bf16.msra.mxu0 %v584_v23  ;;  %518 = vmatprep.subr.bf16.mxu1 %v591_v27 }
  0x3f   :  { %545 = vmatprep.subr.bf16.mxu0 %v691_v14 }
  0x41   :  { %519 = vmatpush3.bf16.msra.mxu1 %v592_v28 }
  0x42   :  { %546 = vmatpush3.bf16.msra.mxu0 %v587_v25  ;;  %520 = vmatprep.subr.bf16.mxu1 %v594_v30 }
  0x43   :  { %547 = vmatprep.subr.bf16.mxu0 %v691_v14 }
  0x45   :  { %521 = vmatpush3.bf16.msra.mxu1 %v595_v31 }
  0x46   :  { %548 = vmatpush3.bf16.msra.mxu0 %v590_v26 }
  0x47   :  { %549 = vmatprep.subr.bf16.mxu0 %v691_v14 }
  0x4a   :  { %550 = vmatpush3.bf16.msra.mxu0 %v593_v29 }
  0x4b   :  { %551 = vmatprep.subr.bf16.mxu0 %v691_v14 }
  0x4e   :  { %552 = vmatpush3.bf16.msra.mxu0 %v596_v32 }
  0xf1   :  { %v137_v41 = vpop.f32.mrf.mxu0 }
  0xf2   :  { %v138_v42 = vadd.f32 %v137_v41, %v70_v38 }
  0xf3   :  { %v139_v43 = vpop.f32.mrf.mxu0 }
  0xf4   :  { %v144_v44 = vmax.f32 %v138_v42, 0.0  ;;  %v140_v45 = vadd.f32 %v139_v43, %v74_v40 }
  0xf5   :  { %v141_v46 = vpop.f32.mrf.mxu0 }
  0xf6   :  { %v160_v47 = vrot.slane %v144_v44, 7  ;;  %v165_v48 = vrot.slane %v144_v44, 1  ;;  %v170_v49 = vpack.c.bf16 %v144_v44, %v144_v44 }
  0xf7   :  { %v142_v50 = vpop.f32.mrf.mxu0 }
  0xf8   :  { %v501_v51 = vpack.c.bf16 %v160_v47, %v160_v47  ;;  %v504_v52 = vpack.c.bf16 %v165_v48, %v165_v48  ;;  %403 = vmatprep.mubr.bf16.mxu1 %v170_v49 }
  0xfa   :  { %502 = vmatmul.mubr.msk.bf16.vlgmr.msra.gmra.mxu1 %vm500_vm5, %v501_v51  ;;  %554 = vmatmul.mubr.msk.bf16.vlgmr.msra.gmra.mxu0 %vm503_vm6, %v504_v52 }
 0x1ba   :  { %v522_v53 = vpop.f32.mrf.mxu1  ;;  %v445_v54 = vpop.f32.mrf.mxu0 }
 0x1bc   :  { %v523_v56 = vpop.f32.mrf.mxu1  ;;  %v555_v57 = vpop.f32.mrf.mxu0 }
 0x1bd   :  { %v524_v58 = vadd.f32 %v523_v56, %v522_v53 }
 0x1be   :  { %v525_v59 = vpop.f32.mrf.mxu1  ;;  %v448_v60 = vpop.f32.mrf.mxu0 }
 0x1bf   :  { %v406_v61 = vadd.f32 %v524_v58, %v475_v55 }
 0x1c0   :  { %v526_v62 = vpop.f32.mrf.mxu1  ;;  %v556_v63 = vpop.f32.mrf.mxu0 }
 0x1c1   :  { %v446_v0 = vadd.f32 %v445_v54, %v406_v61 }
 0x1c3   :  { %v451_v1 = vadd.f32 %v446_v0, %v140_v45 }
 0x1c5   :  { %452 = vst [vmem:[#allocation8] sm:$0xff] %v451_v1 }
 0x1c6   :  { %668 = shalt.err (!%p665_p5)
}
 0x1c7   :  { %462 = dma.vmem_to_hbm [thread:$0]  %s460_s13, 128, %s747_s5, [#allocation4]  }
 0x1c8   :  { %681 = dma.done.wait [#allocation4], 128  }
 0x1c9   :  { %682 = vsyncadd [#allocation4], 4294967168 }
 0x1ca   :  { %466 = vsyncpa [#allocation3], 1 }
 0x1cb   :  { %467 = vsyncpa [#allocation6], 1 }
 0x1cc   :  { %468 = vsyncpa [#allocation4], 1 }

</bundles_post_ra>
